<compile_context>
chip_gen: v7x
topology: tpu7x:2x2x1
jax: 0.10.0
libtpu: 0.0.40
codegen_flags: <defaults>
</compile_context>

<pallas_src>
import jax
import jax.numpy as jnp
from jax.experimental import pallas as pl
from jax.experimental.pallas import tpu as pltpu


def _cdiv(a, b):
    return -(-a // b)


def _round_up(a, m):
    return _cdiv(a, m) * m


def _make_kernel(nh):
    """Kernel over one (3, tile_hw) block of flattened pixels of a single image."""

    def kernel(x_ref, ex_ref, w1_ref, w2b_ref, w3b_ref, o_ref):
        x3 = x_ref[...] - 0.5                                  # (3, TP) f32 == I - 0.5

        # ---- layer 1: [w1_rgb | w1_x w1_y b1] all contracted on the MXU ----------
        # TODO(synk): default here is single-pass bf16; pass f32 operands with
        # precision=jax.lax.Precision.HIGHEST if bit parity with PyTorch is needed.
        w1 = w1_ref[...].astype(jnp.bfloat16)                  # (nh, 6)
        h = jnp.dot(w1[:, :3], x3.astype(jnp.bfloat16),
                    preferred_element_type=jnp.float32)
        h = h + jnp.dot(w1[:, 3:6], ex_ref[...],               # extras = [gx; gy; 1]
                        preferred_element_type=jnp.float32)
        h = jnp.maximum(h, 0.0)

        # ---- layer 2 ---------------------------------------------------------------
        w2b = w2b_ref[...]                                     # (nh, nh+1) f32
        h = jnp.dot(w2b[:, :nh].astype(jnp.bfloat16), h.astype(jnp.bfloat16),
                    preferred_element_type=jnp.float32) + w2b[:, nh:]
        h = jnp.maximum(h, 0.0)

        # ---- layer 3 + residual + sigmoid(5z) == 0.5*tanh(2.5z)+0.5 ----------------
        w3b = w3b_ref[...]                                     # (3, nh+1) f32
        h = jnp.dot(w3b[:, :nh].astype(jnp.bfloat16), h.astype(jnp.bfloat16),
                    preferred_element_type=jnp.float32) + w3b[:, nh:]
        z = h + x3
        o_ref[...] = 0.5 * jnp.tanh(2.5 * z) + 0.5             # tanh runs on the EUP

    return kernel


def recolor_forward(I, packed_params, *, target_tile=16384):
    """I: (N, 3, H, W) float32 (NCHW, matching PyTorch). Returns (N, 3, H, W)."""
    N, C, H, W = I.shape
    assert C == 3
    w1_aug, w2b, w3b = packed_params                 # (nh,6), (nh,nh+1), (3,nh+1)
    nh = w1_aug.shape[0]

    # ---- tiling: lane-dense pixel tiles confined within one image ------------------
    HW = H * W
    tile_hw = min(target_tile, _round_up(HW, 128))
    n_tiles = _cdiv(HW, tile_hw)
    # v7x megacore: guarantee at least 2 grid programs when possible.
    if N * n_tiles < 2 and HW > 128:
        n_tiles = 2
        tile_hw = _round_up(_cdiv(HW, n_tiles), 128)
    HW_pad = n_tiles * tile_hw                       # padded extent of the coord array

    # identity affine_grid coords (align_corners=False): x = (2j+1)/W - 1, y likewise;
    # exact integer index math on the host, one small array shared across the batch.
    p = jnp.arange(HW_pad, dtype=jnp.int32)
    wi = (p % W).astype(jnp.float32)
    hi = (p // W).astype(jnp.float32)
    gx = (2.0 * wi + 1.0) / W - 1.0
    gy = (2.0 * hi + 1.0) / H - 1.0
    extras = jnp.stack([gx, gy, jnp.ones_like(gx)], axis=0).astype(jnp.bfloat16)

    x = I.reshape(N, 3, HW)                          # free reshape, no pad / slice
    kernel = _make_kernel(nh)

    flops = 2 * N * HW_pad * (6 * nh + nh * nh + (nh + 1) * 3)
    bytes_accessed = (2 * 4 * N * HW * 3 + 2 * N * HW_pad * 3
                      + 4 * int(w1_aug.size + w2b.size + w3b.size))

    out = pl.pallas_call(
        kernel,
        out_shape=jax.ShapeDtypeStruct((N, 3, HW), jnp.float32),
        grid_spec=pltpu.PrefetchScalarGridSpec(
            num_scalar_prefetch=0,
            grid=(N, n_tiles),
            in_specs=[
                pl.BlockSpec((None, 3, tile_hw), lambda n, t: (n, 0, t)),  # image block
                pl.BlockSpec((3, tile_hw), lambda n, t: (0, t)),           # [gx; gy; 1]
                pl.BlockSpec((nh, 6), lambda n, t: (0, 0)),                # [w1 | b1]
                pl.BlockSpec((nh, nh + 1), lambda n, t: (0, 0)),           # [w2 | b2]
                pl.BlockSpec((3, nh + 1), lambda n, t: (0, 0)),            # [w3 | b3]
            ],
            out_specs=pl.BlockSpec((None, 3, tile_hw), lambda n, t: (n, 0, t)),
        ),
        compiler_params=pltpu.CompilerParams(
            dimension_semantics=("parallel", "parallel"),
            vmem_limit_bytes=32 * 1024 * 1024),
        cost_estimate=pl.CostEstimate(
            flops=flops,
            transcendentals=3 * N * HW_pad,
            bytes_accessed=bytes_accessed),
    )(x, extras, w1_aug, w2b, w3b)

    return out.reshape(N, 3, H, W)


def init_params(key, nlayers=3, nh=32):
    """Deterministic init of the 1x1-conv stack (5 -> nh -> nh -> 3).

    Conv2d 1x1 weight (out,in,1,1) == matrix (out, in); uniform(-1/sqrt(fan_in), ...)
    like PyTorch's default conv init. Biases stored as (out, 1).
    """
    assert nlayers == 3, "this script instantiates the nlayers=3 configuration"
    dims = [5, nh, nh, 3]
    params = []
    for i in range(3):
        key, kw, kb = jax.random.split(key, 3)
        bound = 1.0 / (dims[i] ** 0.5)  # fan_in = in_channels (1x1 kernel)
        w = jax.random.uniform(kw, (dims[i + 1], dims[i]), jnp.float32, -bound, bound)
        b = jax.random.uniform(kb, (dims[i + 1], 1), jnp.float32, -bound, bound)
        params += [w, b]
    return tuple(params)


def pack_params(params):
    """Consolidate the 6 weight/bias tensors into 3 kernel operands."""
    w1, b1, w2, b2, w3, b3 = params
    w1_aug = jnp.concatenate([w1, b1], axis=1)   # (nh, 6): [rgb(3) | gx | gy | b1]
    w2b = jnp.concatenate([w2, b2], axis=1)      # (nh, nh + 1)
    w3b = jnp.concatenate([w3, b3], axis=1)      # (3, nh + 1)
    return w1_aug, w2b, w3b


def reference_forward(I, params):
    """Pure-JAX reference of the PyTorch forward (aug=False)."""
    N, C, H, W = I.shape
    w1, b1, w2, b2, w3, b3 = params
    gx = (2.0 * jnp.arange(W, dtype=jnp.float32) + 1.0) / W - 1.0
    gy = (2.0 * jnp.arange(H, dtype=jnp.float32) + 1.0) / H - 1.0
    gxy = jnp.stack([jnp.broadcast_to(gx[None, :], (H, W)),
                     jnp.broadcast_to(gy[:, None], (H, W))], axis=0)     # (2, H, W)
    grid = jnp.broadcast_to(gxy[None], (N, 2, H, W))
    h = jnp.concatenate([I - 0.5, grid], axis=1)                          # (N, 5, H, W)
    h = jnp.einsum('oc,nchw->nohw', w1, h) + b1.reshape(1, -1, 1, 1)
    h = jnp.maximum(h, 0.0)
    h = jnp.einsum('oc,nchw->nohw', w2, h) + b2.reshape(1, -1, 1, 1)
    h = jnp.maximum(h, 0.0)
    h = jnp.einsum('oc,nchw->nohw', w3, h) + b3.reshape(1, -1, 1, 1)
    out = h + I - 0.5
    return jax.nn.sigmoid(out * 5.0)


if __name__ == "__main__":
    # TODO(synk): the aug=True branch (torchvision/PIL photometric augmentation) is
    # host-side image processing with no Pallas equivalent; forward implements aug=False.
    key = jax.random.PRNGKey(0)
    kp, ki = jax.random.split(key)

    # nlayers=3, nh=32, sz=1 ; input image batch N=2, 3 channels, 16x16
    params = init_params(kp, nlayers=3, nh=32)
    I = jax.random.uniform(ki, (2, 3, 16, 16), jnp.float32)

    out = recolor_forward(I, pack_params(params))
    out = jax.block_until_ready(out)

    ref = reference_forward(I, params)
    assert out.shape == (2, 3, 16, 16)
    assert bool(jnp.all(jnp.isfinite(out)))
    assert bool(jnp.all((out >= 0.0) & (out <= 1.0)))
    max_err = float(jnp.max(jnp.abs(out - ref)))
    assert max_err < 0.1, f"max abs error vs reference too large: {max_err}"
    print("KERNEL_OK")
</pallas_src>

<mosaic_0001>
module attributes {stable_mosaic.version = 11 : i64} {
  func.func @kernel(%arg0: i32, %arg1: i32, %arg2: memref<1x3x256xf32, #tpu.memory_space<vmem>>, %arg3: memref<3x256xbf16, #tpu.memory_space<vmem>>, %arg4: memref<32x6xf32, #tpu.memory_space<vmem>>, %arg5: memref<32x33xf32, #tpu.memory_space<vmem>>, %arg6: memref<3x33xf32, #tpu.memory_space<vmem>>, %arg7: memref<1x3x256xf32, #tpu.memory_space<vmem>>) attributes {dimension_semantics = [#tpu.dimension_semantics<parallel>, #tpu.dimension_semantics<parallel>], iteration_bounds = array<i64: 2, 1>, scalar_prefetch = 0 : i64, scratch_operands = 0 : i64, tpu.core_type = #tpu.core_type<tc>, window_params = [{transform_indices = @transform_0, window_bounds = array<i64: 1, 3, 256>}, {transform_indices = @transform_1, window_bounds = array<i64: 3, 256>}, {pipeline_mode = #tpu.pipeline_mode<synchronous>, transform_indices = @transform_2, window_bounds = array<i64: 32, 6>}, {pipeline_mode = #tpu.pipeline_mode<synchronous>, transform_indices = @transform_3, window_bounds = array<i64: 32, 33>}, {pipeline_mode = #tpu.pipeline_mode<synchronous>, transform_indices = @transform_4, window_bounds = array<i64: 3, 33>}, {transform_indices = @transform_5, window_bounds = array<i64: 1, 3, 256>}]} {
    %c0 = arith.constant 0 : index
    %c0_0 = arith.constant 0 : index
    %c0_1 = arith.constant 0 : index
    %0 = vector.load %arg2[%c0, %c0_0, %c0_1] : memref<1x3x256xf32, #tpu.memory_space<vmem>>, vector<1x3x256xf32>
    %1 = vector.shape_cast %0 : vector<1x3x256xf32> to vector<3x256xf32>
    %cst = arith.constant 5.000000e-01 : f32
    %2 = vector.broadcast %cst : f32 to vector<3x256xf32>
    %3 = arith.subf %1, %2 : vector<3x256xf32>
    %c0_2 = arith.constant 0 : index
    %c0_3 = arith.constant 0 : index
    %4 = vector.load %arg4[%c0_2, %c0_3] : memref<32x6xf32, #tpu.memory_space<vmem>>, vector<32x6xf32>
    %5 = arith.truncf %4 : vector<32x6xf32> to vector<32x6xbf16>
    %6 = vector.extract_strided_slice %5 {offsets = [0, 0], sizes = [32, 3], strides = [1, 1]} : vector<32x6xbf16> to vector<32x3xbf16>
    %7 = arith.truncf %3 : vector<3x256xf32> to vector<3x256xbf16>
    %cst_4 = arith.constant dense<0.000000e+00> : vector<32x256xf32>
    %8 = tpu.matmul %6, %7, %cst_4 {dimension_numbers = #tpu.dot_dimension_numbers<[1], [0], [0], [1], [0, 0, 1, 1], [], []>} : vector<32x3xbf16>, vector<3x256xbf16>, vector<32x256xf32> -> vector<32x256xf32>
    %9 = vector.extract_strided_slice %5 {offsets = [0, 3], sizes = [32, 3], strides = [1, 1]} : vector<32x6xbf16> to vector<32x3xbf16>
    %c0_5 = arith.constant 0 : index
    %c0_6 = arith.constant 0 : index
    %10 = vector.load %arg3[%c0_5, %c0_6] : memref<3x256xbf16, #tpu.memory_space<vmem>>, vector<3x256xbf16>
    %cst_7 = arith.constant dense<0.000000e+00> : vector<32x256xf32>
    %11 = tpu.matmul %9, %10, %cst_7 {dimension_numbers = #tpu.dot_dimension_numbers<[1], [0], [0], [1], [0, 0, 1, 1], [], []>} : vector<32x3xbf16>, vector<3x256xbf16>, vector<32x256xf32> -> vector<32x256xf32>
    %12 = arith.addf %8, %11 : vector<32x256xf32>
    %cst_8 = arith.constant 0.000000e+00 : f32
    %13 = vector.broadcast %cst_8 : f32 to vector<32x256xf32>
    %14 = arith.maximumf %12, %13 : vector<32x256xf32>
    %c0_9 = arith.constant 0 : index
    %c0_10 = arith.constant 0 : index
    %15 = vector.load %arg5[%c0_9, %c0_10] : memref<32x33xf32, #tpu.memory_space<vmem>>, vector<32x33xf32>
    %16 = vector.extract_strided_slice %15 {offsets = [0, 0], sizes = [32, 32], strides = [1, 1]} : vector<32x33xf32> to vector<32x32xf32>
    %17 = arith.truncf %16 : vector<32x32xf32> to vector<32x32xbf16>
    %18 = arith.truncf %14 : vector<32x256xf32> to vector<32x256xbf16>
    %cst_11 = arith.constant dense<0.000000e+00> : vector<32x256xf32>
    %19 = tpu.matmul %17, %18, %cst_11 {dimension_numbers = #tpu.dot_dimension_numbers<[1], [0], [0], [1], [0, 0, 1, 1], [], []>} : vector<32x32xbf16>, vector<32x256xbf16>, vector<32x256xf32> -> vector<32x256xf32>
    %20 = vector.extract_strided_slice %15 {offsets = [0, 32], sizes = [32, 1], strides = [1, 1]} : vector<32x33xf32> to vector<32x1xf32>
    %21 = vector.broadcast %20 : vector<32x1xf32> to vector<32x256xf32>
    %22 = arith.addf %19, %21 : vector<32x256xf32>
    %cst_12 = arith.constant 0.000000e+00 : f32
    %23 = vector.broadcast %cst_12 : f32 to vector<32x256xf32>
    %24 = arith.maximumf %22, %23 : vector<32x256xf32>
    %c0_13 = arith.constant 0 : index
    %c0_14 = arith.constant 0 : index
    %25 = vector.load %arg6[%c0_13, %c0_14] : memref<3x33xf32, #tpu.memory_space<vmem>>, vector<3x33xf32>
    %26 = vector.extract_strided_slice %25 {offsets = [0, 0], sizes = [3, 32], strides = [1, 1]} : vector<3x33xf32> to vector<3x32xf32>
    %27 = arith.truncf %26 : vector<3x32xf32> to vector<3x32xbf16>
    %28 = arith.truncf %24 : vector<32x256xf32> to vector<32x256xbf16>
    %cst_15 = arith.constant dense<0.000000e+00> : vector<3x256xf32>
    %29 = tpu.matmul %27, %28, %cst_15 {dimension_numbers = #tpu.dot_dimension_numbers<[1], [0], [0], [1], [0, 0, 1, 1], [], []>} : vector<3x32xbf16>, vector<32x256xbf16>, vector<3x256xf32> -> vector<3x256xf32>
    %30 = vector.extract_strided_slice %25 {offsets = [0, 32], sizes = [3, 1], strides = [1, 1]} : vector<3x33xf32> to vector<3x1xf32>
    %31 = vector.broadcast %30 : vector<3x1xf32> to vector<3x256xf32>
    %32 = arith.addf %29, %31 : vector<3x256xf32>
    %33 = arith.addf %32, %3 : vector<3x256xf32>
    %cst_16 = arith.constant 2.500000e+00 : f32
    %34 = vector.broadcast %cst_16 : f32 to vector<3x256xf32>
    %35 = arith.mulf %34, %33 : vector<3x256xf32>
    %36 = math.tanh %35 : vector<3x256xf32>
    %cst_17 = arith.constant 5.000000e-01 : f32
    %37 = vector.broadcast %cst_17 : f32 to vector<3x256xf32>
    %38 = arith.mulf %37, %36 : vector<3x256xf32>
    %cst_18 = arith.constant 5.000000e-01 : f32
    %39 = vector.broadcast %cst_18 : f32 to vector<3x256xf32>
    %40 = arith.addf %38, %39 : vector<3x256xf32>
    %c0_19 = arith.constant 0 : index
    %c0_20 = arith.constant 0 : index
    %c0_21 = arith.constant 0 : index
    %41 = vector.load %arg7[%c0_19, %c0_20, %c0_21] : memref<1x3x256xf32, #tpu.memory_space<vmem>>, vector<1x3x256xf32>
    %42 = vector.shape_cast %41 : vector<1x3x256xf32> to vector<3x256xf32>
    %43 = vector.shape_cast %40 : vector<3x256xf32> to vector<1x3x256xf32>
    tpu.vector_store %arg7[%c0_19, %c0_20, %c0_21], %43 {strides = array<i32>} : memref<1x3x256xf32, #tpu.memory_space<vmem>>, vector<1x3x256xf32>,
    return
  }
  func.func @transform_0(%arg0: i32, %arg1: i32) -> (i32, i32, i32) {
    %c0_i32 = arith.constant 0 : i32
    %c0_i32_0 = arith.constant 0 : i32
    return %arg0, %c0_i32, %arg1 : i32, i32, i32
  }
  func.func @transform_1(%arg0: i32, %arg1: i32) -> (i32, i32) {
    %c0_i32 = arith.constant 0 : i32
    %c0_i32_0 = arith.constant 0 : i32
    return %c0_i32, %arg1 : i32, i32
  }
  func.func @transform_2(%arg0: i32, %arg1: i32) -> (i32, i32) {
    %c0_i32 = arith.constant 0 : i32
    %c0_i32_0 = arith.constant 0 : i32
    %c0_i32_1 = arith.constant 0 : i32
    return %c0_i32, %c0_i32_0 : i32, i32
  }
  func.func @transform_3(%arg0: i32, %arg1: i32) -> (i32, i32) {
    %c0_i32 = arith.constant 0 : i32
    %c0_i32_0 = arith.constant 0 : i32
    %c0_i32_1 = arith.constant 0 : i32
    return %c0_i32, %c0_i32_0 : i32, i32
  }
  func.func @transform_4(%arg0: i32, %arg1: i32) -> (i32, i32) {
    %c0_i32 = arith.constant 0 : i32
    %c0_i32_0 = arith.constant 0 : i32
    %c0_i32_1 = arith.constant 0 : i32
    return %c0_i32, %c0_i32_0 : i32, i32
  }
  func.func @transform_5(%arg0: i32, %arg1: i32) -> (i32, i32, i32) {
    %c0_i32 = arith.constant 0 : i32
    %c0_i32_0 = arith.constant 0 : i32
    return %arg0, %c0_i32, %arg1 : i32, i32, i32
  }
}

</mosaic_0001>

<bundles_post_ra>
// kernel: tpu_custom_call.1
= control target key start
LH: loop header
LB: loop body
LE: loop exit
PB: predicated region body
PF: predicated region fallthrough
CT: control target
= control target key end

     0   :  { %s852_s18 = smov 0   ;;  %s854_s19 = smov 0   ;;  %s953_s0 = inlined_call_operand.vmem [shape: f32[2,3,256], index: 0, kind: input, shape index: {}]   ;;  %s954_s1 = inlined_call_operand.vmem [shape: bf16[3,256], index: 1, kind: input, shape index: {}]   ;;  %s955_s2 = inlined_call_operand.vmem [shape: f32[32,6], index: 2, kind: input, shape index: {}]   ;;  %s956_s3 = inlined_call_operand.vmem [shape: f32[32,33], index: 3, kind: input, shape index: {}]   ;;  %s957_s4 = inlined_call_operand.vmem [shape: f32[3,33], index: 4, kind: input, shape index: {}]   ;;  %s958_s5 = inlined_call_operand.vmem [shape: f32[2,3,256], index: 5, kind: output, shape index: {}]  }
   0x1   :  { %s856_s20 = smov 0  }
   0x2 LB: > { %s27_s21 = sadd.s32 1, %s812_s19  ;;  %p734_p0 = scmp.ge.s32.totalorder %s816_s20, 1  ;;  %s816_s20 = sphi %s856_s20, %s15_s20   ;;  %s812_s19 = sphi %s854_s19, %s960_s19   ;;  %s808_s18 = sphi %s852_s18, %s959_s18  }
   0x3   : > { %p29_p1 = scmp.ge.s32.totalorder %s27_s21, 2  ;;  %p219_p2 = scmp.lt.s32.totalorder %s816_s20, 3 }
   0x5   : > { %s962_s21 = smov (%p29_p1, %s27_s21), 0  ;;  %p220_p3 = pnand %p734_p0, %p219_p2 }
   0x6   : > { %v289_v0 = vld [vmem:[%s955_s2] sm:$0xff] (!%p220_p3)  ;;  %v290_v1 = vld [vmem:[%s955_s2 + $0x8] sm:$0xff] (!%p220_p3)  ;;  %v291_v2 = vld [vmem:[%s955_s2 + $0x10] sm:$0xff] (!%p220_p3)  ;;  %vm323_vm0 = vcmask (!%p220_p3), 1040384   ;;  %vm324_vm1 = vcmask (!%p220_p3), 1041408   ;;  %v818_v7 = vmov (!%p220_p3), 65535  }
   0x7   : > { %223 = sbr.rel (%p220_p3) target bundleno = 841 (0x349), region = 40  ;;  %v293_v3 = vpack.c.bf16 (!%p220_p3), %v290_v1, %v289_v0  ;;  %v292_v4 = vld [vmem:[%s955_s2 + $0x18] sm:$0xff] (!%p220_p3)  ;;  %v740_v5 = vld.sshfl [vmem:[%s954_s1] sm:$0x33 pattern:$0x76325410] (!%p220_p3) }
   0x8   : > { %v315_v6 = vcombine.high (!%p220_p3), %v740_v5, %v740_v5  ;;  %v325_v8 = vsel (!%p220_p3), %vm323_vm0, 4294967295, %v818_v7  ;;  %p261_p4 = scmp.lt.s32.totalorder (!%p220_p3), %s808_s18, 1  ;;  %s819_s7 = smov (!%p220_p3), 125   ;;  %v294_v9 = vpack.c.bf16 (!%p220_p3), %v292_v4, %v291_v2  ;;  %v820_v11 = vmov (!%p220_p3), 0   ;;  %v459_v23 = vld [vmem:[%s956_s3] sm:$0xff] (!%p220_p3)  ;;  %v460_v24 = vld [vmem:[%s956_s3 + $0x8] sm:$0xff] (!%p220_p3) }
   0x9   : > { %303 = vrot.lane.b32.xlu0 (!%p220_p3), %v293_v3, %s819_s7  ;;  %v326_v10 = vsel (!%p220_p3), %vm324_vm1, %v325_v8, 0  ;;  %365 = vmatprep.mubr.bf16.mxu0 (!%p220_p3), %v820_v11  ;;  %vm316_vm2 = vcmask (!%p220_p3), 23552   ;;  %v463_v25 = vpack.c.bf16 (!%p220_p3), %v460_v24, %v459_v23  ;;  %v461_v26 = vld [vmem:[%s956_s3 + $0x10] sm:$0xff] (!%p220_p3)  ;;  %v462_v27 = vld [vmem:[%s956_s3 + $0x18] sm:$0xff] (!%p220_p3)  ;;  %v821_v29 = vmov (!%p220_p3), 32  }
   0xa   : > { %v331_v12 = vand.u32 (!%p220_p3), %v326_v10, %v315_v6  ;;  %v328_v13 = vand.u32 (!%p220_p3), %v740_v5, %v326_v10  ;;  %528 = vmatprep.mubr.bf16.mxu1 (!%p220_p3), %v820_v11  ;;  %v464_v28 = vpack.c.bf16 (!%p220_p3), %v462_v27, %v461_v26  ;;  %788 = vset.pattern.permute.xlu1 (!%p220_p3), %v821_v29  ;;  %v927_v30 = vld [vmem:[%s957_s4] sm:$0x7] (!%p220_p3)  ;;  %vm489_vm3 = vcmask (!%p220_p3), 261120  }
   0xb   : > { %789 = vset.pattern.permute.xlu0 (!%p220_p3), %v821_v29  ;;  %471 = vperm.xlu1 (!%p220_p3), %788, %v459_v23  }
   0xc   : > { %333 = vmatprep.subr.bf16.mxu0 (!%p220_p3), %v331_v12 }
   0xd   : > { %305 = vrot.lane.b32.xlu0 (!%p220_p3), %v294_v9, %s819_s7  ;;  %334 = vmatpush1.bf16.msra.mxu0 (!%p220_p3), %v328_v13 }
   0xe   : > { %s964_s18 = smov (!%p261_p4, %s808_s18), 1 }
   0xf   : > { %s750_s8 = sshll.u32 %s964_s18, 3  ;;  %476 = vperm.xlu1 %788, %v460_v24  }
  0x10   : > { %s268_s11 = scalar_lea.vmem %s953_s0, %s750_s8  ;;  %s284_s28 = scalar_lea.vmem %s958_s5, %s750_s8 }
  0x11   : > { %v287_v14 = vld [vmem:[%s268_s11] sm:$0x77]  ;;  %481 = vperm.xlu0 %789, %v461_v26  }
  0x12   : > { %v899_v15 = vadd.f32 -0.5, %v287_v14 }
  0x13   : > { %486 = vperm.xlu1 %788, %v462_v27  }
  0x14   : > { %v903_v16 = vcombine.high %v899_v15, %v899_v15  ;;  %v298_v19 = vpack.c.bf16 %v899_v15, %v899_v15 }
  0x16   : > { %v299_v17 = vpack.c.bf16 %v903_v16, %v903_v16  ;;  %v393_v20 = vand.u32 %v326_v10, %v298_v19 }
  0x17   : > { %565 = vperm.xlu1 %788, %v927_v30  }
  0x18   : > { %v396_v18 = vand.u32 %v326_v10, %v299_v17 }
  0x1a   : > { %398 = vmatprep.subr.bf16.mxu0 %v396_v18 }
  0x7b   : > { %v304_v21 = vpop.permute.xlu0 %303 }
  0x7c   : > { %741 = vmatmul.mubr.msk.bf16.vlgmr.msra.gmra.mrb[0].mxu0 %vm316_vm2, %v304_v21  ;;  %v558_v21 = vpack.c.bf16 %v927_v30, %v927_v30 }
  0x7d   : > { %399 = vmatpush1.bf16.msra.mxu0 %v393_v20  ;;  %375 = vmatprep.mubr.bf16.mxu0 %v820_v11 }
  0x7f   : > { %v306_v22 = vpop.permute.xlu0 %305 }
  0x84   : > { %742 = vmatmul.mubr.msk.bf16.gmra.mrb[4].mxu0 %vm316_vm2, %v306_v22 }
  0x85   : > { %430 = vmatprep.mubr.bf16.mxu0 %v820_v11 }
  0x8a   : > { %v472_v51 = vpop.permute.xlu1 %471 }
  0x8c   : > { %743 = vmatmul.mubr.msk.bf16.vlgmr.msra.gmra.mrb[0].mxu0 %vm316_vm2, %v293_v3 }
  0x8d   : > { %440 = vmatprep.mubr.bf16.mxu0 %v820_v11 }
  0x8e   : > { %v477_v55 = vpop.permute.xlu1 %476 }
  0x90   : > { %v482_v1 = vpop.permute.xlu0 %481 }
  0x92   : > { %v487_v7 = vpop.permute.xlu1 %486 }
  0x94   : > { %744 = vmatmul.mubr.msk.bf16.gmra.mrb[4].mxu0 %vm316_vm2, %v294_v9 }
  0x96   : > { %v566_v22 = vpop.permute.xlu1 %565 }
 0x15f   : > { %v432_v31 = vpop.f32.mrb[0].mxu0 }
 0x160   : > { %v434_v32 = vpop.f32.mrb[1].mxu0  ;;  %v451_v34 = vmax.f32 %v432_v31, 0.0 }
 0x161   : > { %v436_v33 = vpop.f32.mrb[2].mxu0  ;;  %v452_v37 = vmax.f32 %v434_v32, 0.0 }
 0x162   : > { %v453_v35 = vmax.f32 %v436_v33, 0.0  ;;  %v438_v36 = vpop.f32.mrb[3].mxu0 }
 0x163   : > { %v454_v38 = vmax.f32 %v438_v36, 0.0 }
 0x164   : > { %v465_v39 = vpack.c.bf16 %v453_v35, %v451_v34 }
 0x165   : > { %v466_v40 = vpack.c.bf16 %v454_v38, %v452_v37 }
 0x167   : > { %v442_v41 = vpop.f32.mrb[4].mxu0  ;;  %496 = vmatprep.subr.bf16.mxu1 %v466_v40 }
 0x168   : > { %v444_v42 = vpop.f32.mrb[5].mxu0  ;;  %497 = vmatpush1.bf16.msra.mxu1 %v465_v39  ;;  %v455_v44 = vmax.f32 %v442_v41, 0.0 }
 0x169   : > { %v446_v43 = vpop.f32.mrb[6].mxu0  ;;  %v456_v47 = vmax.f32 %v444_v42, 0.0 }
 0x16a   : > { %v457_v45 = vmax.f32 %v446_v43, 0.0  ;;  %v448_v46 = vpop.f32.mrb[7].mxu0 }
 0x16b   : > { %v458_v48 = vmax.f32 %v448_v46, 0.0 }
 0x16c   : > { %v467_v49 = vpack.c.bf16 %v457_v45, %v455_v44 }
 0x16d   : > { %v468_v50 = vpack.c.bf16 %v458_v48, %v456_v47 }
 0x16f   : > { %498 = vmatprep.subr.bf16.mxu1 %v468_v50 }
 0x170   : > { %499 = vmatpush1.bf16.msra.mxu1 %v467_v49 }
 0x173   : > { %745 = vmatmul.mubr.msk.bf16.vlgmr.msra.gmra.mrb[0].mxu1 %vm489_vm3, %v463_v25 }
 0x174   : > { %538 = vmatprep.mubr.bf16.mxu1 %v820_v11 }
 0x17b   : > { %746 = vmatmul.mubr.msk.bf16.gmra.mrb[4].mxu1 %vm489_vm3, %v464_v28 }
 0x17c   : > { %603 = vmatprep.mubr.bf16.mxu1 %v820_v11 }
 0x246   : > { %v530_v52 = vpop.f32.mrb[0].mxu1 }
 0x247   : > { %v531_v53 = vadd.f32 %v530_v52, %v472_v51  ;;  %v532_v54 = vpop.f32.mrb[1].mxu1 }
 0x248   : > { %v533_v56 = vadd.f32 %v532_v54, %v472_v51  ;;  %v534_v57 = vpop.f32.mrb[2].mxu1 }
 0x249   : > { %v535_v58 = vadd.f32 %v534_v57, %v477_v55  ;;  %v536_v59 = vpop.f32.mrb[3].mxu1  ;;  %v549_v61 = vmax.f32 %v531_v53, 0.0 }
 0x24a   : > { %v537_v60 = vadd.f32 %v536_v59, %v477_v55  ;;  %v550_v63 = vmax.f32 %v533_v56, 0.0 }
 0x24b   : > { %v551_v62 = vmax.f32 %v535_v58, 0.0 }
 0x24c   : > { %v552_v0 = vmax.f32 %v537_v60, 0.0 }
 0x24d   : > { %v559_v2 = vpack.c.bf16 %v551_v62, %v549_v61 }
 0x24e   : > { %v560_v3 = vpack.c.bf16 %v552_v0, %v550_v63  ;;  %v540_v4 = vpop.f32.mrb[4].mxu1 }
 0x24f   : > { %v541_v5 = vadd.f32 %v540_v4, %v482_v1  ;;  %v542_v6 = vpop.f32.mrb[5].mxu1 }
 0x250   : > { %v543_v8 = vadd.f32 %v542_v6, %v482_v1  ;;  %v544_v9 = vpop.f32.mrb[6].mxu1  ;;  %571 = vmatprep.subr.bf16.mxu1 %v560_v3 }
 0x251   : > { %v545_v10 = vadd.f32 %v544_v9, %v487_v7  ;;  %v546_v11 = vpop.f32.mrb[7].mxu1  ;;  %572 = vmatpush1.bf16.msra.mxu1 %v559_v2  ;;  %v553_v13 = vmax.f32 %v541_v5, 0.0 }
 0x252   : > { %v547_v12 = vadd.f32 %v546_v11, %v487_v7  ;;  %v554_v17 = vmax.f32 %v543_v8, 0.0 }
 0x253   : > { %v555_v14 = vmax.f32 %v545_v10, 0.0 }
 0x254   : > { %v556_v18 = vmax.f32 %v547_v12, 0.0 }
 0x255   : > { %v561_v19 = vpack.c.bf16 %v555_v14, %v553_v13 }
 0x256   : > { %v562_v20 = vpack.c.bf16 %v556_v18, %v554_v17 }
 0x258   : > { %573 = vmatprep.subr.bf16.mxu1 %v562_v20 }
 0x259   : > { %574 = vmatpush1.bf16.msra.mxu1 %v561_v19 }
 0x25c   : > { %747 = vmatmul.mubr.msk.bf16.vlgmr.msra.gmra.mrb[8].mxu1 %vm489_vm3, %v558_v21 }
 0x32f   : > { %v605_v23 = vpop.f32.mrb[8].mxu1 }
 0x330   : > { %v606_v24 = vadd.f32 %v605_v23, %v566_v22  ;;  %v607_v25 = vpop.f32.mrb[9].mxu1 }
 0x331   : > { %v608_v26 = vadd.f32 %v607_v25, %v566_v22  ;;  %v609_v27 = vpop.f32.mrb[10].mxu1 }
 0x332   : > { %v612_v28 = vadd.f32 %v899_v15, %v606_v24  ;;  %v610_v29 = vpop.f32.mrb[11].mxu1 }
 0x333   : > { %v613_v31 = vadd.f32 %v608_v26, %v903_v16 }
 0x334   : > { %v614_v32 = vmul.f32 2.5, %v612_v28 }
 0x335   : > { %v615_v33 = vmul.f32 2.5, %v613_v31 }
 0x336   : > { %790 = vtanh.f32 %v614_v32 }
 0x337   : > { %792 = vtanh.f32 %v615_v33 }
 0x340   : > { %v791_v30 = vpop.eup %790 }
 0x341   : > { %v793_v34 = vpop.eup %792  ;;  %v618_v35 = vmul.f32 0.5, %v791_v30 }
 0x342   : > { %v619_v36 = vmul.f32 0.5, %v793_v34 }
 0x343   : > { %v620_v37 = vadd.f32 0.5, %v618_v35 }
 0x344   : > { %v621_v38 = vadd.f32 0.5, %v619_v36 }
 0x346   : > { %v624_v39 = vcombine.low %v620_v37, %v621_v38 }
 0x348   : > { %626 = vst [vmem:[%s284_s28] sm:$0x77] %v624_v39 }
 0x349 PF: > { %s15_s20 = sadd.s32 1, %s816_s20   ;;  %s959_s18 = smov %s812_s19 }
 0x34a   : > { %p12_p5 = scmp.ge.s32.totalorder %s15_s20, 4   ;;  %s960_s19 = smov %s962_s21 }
 0x34c   :  { %14 = sbr.rel (!%p12_p5) target bundleno = 2 (0x2), region = 73 }

</bundles_post_ra>
